<compile_context>
chip_gen: v6e
topology: v6e:2x2x1
jax: 0.10.0
libtpu: 0.0.40
codegen_flags: <defaults>
</compile_context>

<pallas_src>
import functools

import jax
import jax.numpy as jnp
import numpy as np
from jax.experimental import pallas as pl
from jax.experimental.pallas import tpu as pltpu


# Config flag: force the split (two-plane + XLA interleave) path, bypassing the
# fused strided-store kernel and its AOT probe.
_FORCE_SPLIT = False


def _sublane_multiple(dtype):
    """Sublane tile multiple: 8 for f32, 16 for bf16/f16, 32 for int8/fp8."""
    return max(8, 32 // jnp.dtype(dtype).itemsize)


def _choose_block_rows(nc, hw, dtype):
    """Images (rows) per grid step.

    ~2 MiB of input per step (output is 2x) -> double-buffered working set of
    ~12 MiB, inside every generation's default scoped VMEM (v5e 16 MiB,
    v6e/v7x 32 MiB).  Measured mem-bound tilings: ~1 MiB tiles reach ~85% of
    the HBM roofline, 2-4 MiB ~86%+, so larger blocks buy little but risk v5e.
    """
    itemsize = jnp.dtype(dtype).itemsize
    sub = _sublane_multiple(dtype)
    if nc <= sub:
        return nc                                   # block dim == full dim is legal
    budget_rows = max(1, (2 << 20) // (hw * itemsize))      # ~2 MiB input / step
    t = min(budget_rows, nc)
    if nc >= 2 * sub:
        t = min(t, nc // 2)                          # >= 2 grid steps (v7x: 2 TCs)
    t = max(sub, (t // sub) * sub)                   # dtype-aware sublane multiple
    return min(t, nc)


def _compiler_params():
    return pltpu.CompilerParams(
        dimension_semantics=("parallel",),           # independent image blocks
        vmem_limit_bytes=32 * 1024 * 1024,           # headroom; <= physical on all gens
    )


def _make_kernel(H, W, fused):
    HW = H * W

    def kernel(x_ref, *out_refs):
        x = x_ref[...]                                        # (T, HW), lane-dense

        # Neighbour gathers as non-negative-shift rolls (pltpu.roll == jnp.roll:
        # values move to higher indices); wrap-around lanes are masked below.
        nxt_w = pltpu.roll(x, shift=(HW - 1) % HW, axis=1)    # x[k+1 (mod HW)]
        nxt_h = pltpu.roll(x, shift=(HW - W) % HW, axis=1)    # x[k+W (mod HW)]

        # Lane masks at (1, HW); jnp.where broadcasts them over the T rows.
        lane = jax.lax.broadcasted_iota(jnp.int32, (1, HW), 1)
        zero = jnp.zeros((), x.dtype)
        # d/dW valid where w < W-1 (lane % W < W-1); wrap-around -> 0.
        dx = jnp.where(lane % W < (W - 1), nxt_w - x, zero)
        # d/dH valid where h < H-1 (lane < (H-1)*W); wrap-around -> 0.
        dy = jnp.where(lane < (HW - W), nxt_h - x, zero)

        if fused:
            # Interleave straight into the (T, 2*HW) output block with two
            # lane-strided stores; no (T, HW, 2) intermediate / relayout.
            out_refs[0][:, pl.ds(0, HW, stride=2)] = dx
            out_refs[0][:, pl.ds(1, HW, stride=2)] = dy
        else:
            out_refs[0][...] = dx
            out_refs[1][...] = dy

    return kernel


@functools.lru_cache(maxsize=None)
def _build_fused(NC, HW, H, W, T, dtype_name):
    dtype = jnp.dtype(dtype_name)
    grid = (pl.cdiv(NC, T),)
    return pl.pallas_call(
        _make_kernel(H, W, fused=True),
        grid=grid,
        in_specs=[pl.BlockSpec((T, HW), lambda i: (i, 0))],
        out_specs=pl.BlockSpec((T, 2 * HW), lambda i: (i, 0)),
        out_shape=jax.ShapeDtypeStruct((NC, 2 * HW), dtype),
        compiler_params=_compiler_params(),
    )


@functools.lru_cache(maxsize=None)
def _build_split(NC, HW, H, W, T, dtype_name):
    dtype = jnp.dtype(dtype_name)
    grid = (pl.cdiv(NC, T),)
    return pl.pallas_call(
        _make_kernel(H, W, fused=False),
        grid=grid,
        in_specs=[pl.BlockSpec((T, HW), lambda i: (i, 0))],
        out_specs=[pl.BlockSpec((T, HW), lambda i: (i, 0)),
                   pl.BlockSpec((T, HW), lambda i: (i, 0))],
        out_shape=[jax.ShapeDtypeStruct((NC, HW), dtype),
                   jax.ShapeDtypeStruct((NC, HW), dtype)],
        compiler_params=_compiler_params(),
    )


@functools.lru_cache(maxsize=None)
def _fused_lowers(NC, HW, H, W, T, dtype_name):
    """One-time AOT probe (per shape/dtype): does the lane-strided fused store
    lower and compile on this Mosaic build?  Runs at Python/compile time, not
    as a runtime try/except inside a jitted computation (which jit would bypass).
    Any failure here only selects the always-correct split fallback."""
    try:
        fn = _build_fused(NC, HW, H, W, T, dtype_name)
        x_spec = jax.ShapeDtypeStruct((NC, HW), jnp.dtype(dtype_name))
        jax.jit(fn).lower(x_spec).compile()
        return True
    except Exception:
        return False


def grad_forward(x):
    """Pallas implementation of Grad.forward: x (N, C, H, W) -> (N, C, H, W, 2)."""
    N, C, H, W = x.shape
    NC, HW = N * C, H * W
    dtype_name = jnp.dtype(x.dtype).name
    xf = x.reshape(NC, HW)                          # free row-major reshape
    T = _choose_block_rows(NC, HW, x.dtype)

    if not _FORCE_SPLIT and _fused_lowers(NC, HW, H, W, T, dtype_name):
        out = _build_fused(NC, HW, H, W, T, dtype_name)(xf)   # (NC, 2*HW) interleaved
        # (NC, 2*HW) row-major == (N, C, H, W, 2) row-major -> metadata-only reshape.
        return out.reshape(N, C, H, W, 2)

    # Fallback: two lane-dense planes + one XLA interleave pass (costs an extra
    # HBM read+write of both planes, but is guaranteed to compile).
    dx, dy = _build_split(NC, HW, H, W, T, dtype_name)(xf)
    return jnp.stack([dx, dy], axis=-1).reshape(N, C, H, W, 2)


def grad_reference(x):
    """Pure-JAX reference mirroring the PyTorch semantics."""
    N, C, H, W = x.shape
    grad = jnp.zeros((N, C, H, W, 2), dtype=x.dtype)
    grad = grad.at[:, :, :, :-1, 0].add(x[:, :, :, 1:] - x[:, :, :, :-1])
    grad = grad.at[:, :, :-1, :, 1].add(x[:, :, 1:, :] - x[:, :, :-1, :])
    return grad


if __name__ == "__main__":
    key = jax.random.PRNGKey(0)
    N, C, H, W = 2, 4, 16, 16
    x = jax.random.normal(key, (N, C, H, W), dtype=jnp.float32)

    out = jax.block_until_ready(grad_forward(x))
    ref = grad_reference(x)

    assert out.shape == (N, C, H, W, 2), out.shape
    np.testing.assert_allclose(np.asarray(out), np.asarray(ref), rtol=1e-6, atol=1e-6)

    print("KERNEL_OK")
</pallas_src>

<mosaic_0001>
module attributes {stable_mosaic.version = 11 : i64} {
  func.func @kernel(%arg0: i32, %arg1: memref<8x256xf32, #tpu.memory_space<vmem>>, %arg2: memref<8x256xf32, #tpu.memory_space<vmem>>, %arg3: memref<8x256xf32, #tpu.memory_space<vmem>>) attributes {dimension_semantics = [#tpu.dimension_semantics<parallel>], iteration_bounds = array<i64: 1>, scalar_prefetch = 0 : i64, scratch_operands = 0 : i64, tpu.core_type = #tpu.core_type<tc>, window_params = [{transform_indices = @transform_0, window_bounds = array<i64: 8, 256>}, {transform_indices = @transform_1, window_bounds = array<i64: 8, 256>}, {transform_indices = @transform_2, window_bounds = array<i64: 8, 256>}]} {
    %c0 = arith.constant 0 : index
    %c0_0 = arith.constant 0 : index
    %0 = vector.load %arg1[%c0, %c0_0] : memref<8x256xf32, #tpu.memory_space<vmem>>, vector<8x256xf32>
    %c255_i32 = arith.constant 255 : i32
    %1 = tpu.dynamic_rotate %0 by %c255_i32 dim 1 : vector<8x256xf32>, i32 -> vector<8x256xf32>
    %c240_i32 = arith.constant 240 : i32
    %2 = tpu.dynamic_rotate %0 by %c240_i32 dim 1 : vector<8x256xf32>, i32 -> vector<8x256xf32>
    %3 = tpu.iota {dimensions = array<i32: 1>} : vector<1x256xi32>
    %c16_i32 = arith.constant 16 : i32
    %c0_i32 = arith.constant 0 : i32
    %4 = arith.cmpi eq, %c16_i32, %c0_i32 : i32
    %c1_i32 = arith.constant 1 : i32
    %5 = arith.select %4, %c1_i32, %c16_i32 : i32
    %6 = vector.broadcast %5 : i32 to vector<1x256xi32>
    %7 = arith.remsi %3, %6 : vector<1x256xi32>
    %c0_i32_1 = arith.constant 0 : i32
    %8 = vector.broadcast %c0_i32_1 : i32 to vector<1x256xi32>
    %9 = arith.cmpi ne, %7, %8 : vector<1x256xi32>
    %c0_i32_2 = arith.constant 0 : i32
    %10 = vector.broadcast %c0_i32_2 : i32 to vector<1x256xi32>
    %11 = arith.cmpi slt, %7, %10 : vector<1x256xi32>
    %c0_i32_3 = arith.constant 0 : i32
    %12 = arith.cmpi slt, %5, %c0_i32_3 : i32
    %13 = vector.broadcast %12 : i1 to vector<1x256xi1>
    %14 = vector.broadcast %13 : vector<1x256xi1> to vector<1x256xi1>
    %15 = arith.xori %11, %14 : vector<1x256xi1>
    %16 = arith.andi %15, %9 : vector<1x256xi1>
    %17 = vector.broadcast %5 : i32 to vector<1x256xi32>
    %18 = arith.addi %7, %17 : vector<1x256xi32>
    %19 = arith.select %16, %18, %7 : vector<1x256xi1>, vector<1x256xi32>
    %c15_i32 = arith.constant 15 : i32
    %20 = vector.broadcast %c15_i32 : i32 to vector<1x256xi32>
    %21 = arith.cmpi slt, %19, %20 : vector<1x256xi32>
    %22 = arith.subf %1, %0 : vector<8x256xf32>
    %cst = arith.constant 0.000000e+00 : f32
    %23 = vector.shape_cast %21 : vector<1x256xi1> to vector<1x256xi1>
    %24 = vector.broadcast %23 : vector<1x256xi1> to vector<8x256xi1>
    %25 = vector.broadcast %cst : f32 to vector<8x256xf32>
    %26 = arith.select %24, %22, %25 : vector<8x256xi1>, vector<8x256xf32>
    %c240_i32_4 = arith.constant 240 : i32
    %27 = vector.broadcast %c240_i32_4 : i32 to vector<1x256xi32>
    %28 = arith.cmpi slt, %3, %27 : vector<1x256xi32>
    %29 = arith.subf %2, %0 : vector<8x256xf32>
    %cst_5 = arith.constant 0.000000e+00 : f32
    %30 = vector.shape_cast %28 : vector<1x256xi1> to vector<1x256xi1>
    %31 = vector.broadcast %30 : vector<1x256xi1> to vector<8x256xi1>
    %32 = vector.broadcast %cst_5 : f32 to vector<8x256xf32>
    %33 = arith.select %31, %29, %32 : vector<8x256xi1>, vector<8x256xf32>
    %c0_6 = arith.constant 0 : index
    %c0_7 = arith.constant 0 : index
    %34 = vector.load %arg2[%c0_6, %c0_7] : memref<8x256xf32, #tpu.memory_space<vmem>>, vector<8x256xf32>
    tpu.vector_store %arg2[%c0_6, %c0_7], %26 {strides = array<i32>} : memref<8x256xf32, #tpu.memory_space<vmem>>, vector<8x256xf32>,
    %c0_8 = arith.constant 0 : index
    %c0_9 = arith.constant 0 : index
    %35 = vector.load %arg3[%c0_8, %c0_9] : memref<8x256xf32, #tpu.memory_space<vmem>>, vector<8x256xf32>
    tpu.vector_store %arg3[%c0_8, %c0_9], %33 {strides = array<i32>} : memref<8x256xf32, #tpu.memory_space<vmem>>, vector<8x256xf32>,
    return
  }
  func.func @transform_0(%arg0: i32) -> (i32, i32) {
    %c0_i32 = arith.constant 0 : i32
    %c0_i32_0 = arith.constant 0 : i32
    return %arg0, %c0_i32 : i32, i32
  }
  func.func @transform_1(%arg0: i32) -> (i32, i32) {
    %c0_i32 = arith.constant 0 : i32
    %c0_i32_0 = arith.constant 0 : i32
    return %arg0, %c0_i32 : i32, i32
  }
  func.func @transform_2(%arg0: i32) -> (i32, i32) {
    %c0_i32 = arith.constant 0 : i32
    %c0_i32_0 = arith.constant 0 : i32
    return %arg0, %c0_i32 : i32, i32
  }
}

</mosaic_0001>

<bundles_post_ra>
// kernel: tpu_custom_call.1
= control target key start
LH: loop header
LB: loop body
LE: loop exit
PB: predicated region body
PF: predicated region fallthrough
CT: control target
= control target key end

     0   :  { %8 = vsyncpa [#allocation3], 0  ;;  %s232_s0 = inlined_call_operand.hbm [shape: f32[8,256], index: 0, kind: input, shape index: {}]   ;;  %s233_s1 = inlined_call_operand.hbm [shape: f32[8,256], index: 1, kind: output, shape index: {0}]   ;;  %s234_s2 = inlined_call_operand.hbm [shape: f32[8,256], index: 2, kind: output, shape index: {1}]  }
   0x1   :  { %9 = vsyncpa [#allocation4], 0 }
   0x2   :  { %10 = vsyncpa [#allocation7], 0  ;;  %s191_s9 = smov [#allocation2]  }
   0x3   :  { %s17_s10 = sshll.u32 %s191_s9, 4  ;;  %s18_s10 = int_to_ptr.vmem [resolvable:$true] %s17_s10 }
   0x4   :  { %s133_s11 = scalar_lea.vmem %s18_s10, 256  ;;  %p138_p1 = scmp.lt.s32.totalorder %s18_s10, %s18_s10 }
   0x5   :  { %p134_p0 = scmp.ne.s32.totalorder %s18_s10, %s133_s11  ;;  %p139_p2 = scmp.lt.s32.totalorder %s133_s11, %s133_s11 }
   0x7   :  { %p140_p3 = por %p139_p2, %p138_p1 }
   0x9   :  { %p141_p4 = pnand %p140_p3, %p134_p0 }
   0xb   :  { %144 = shalt.err (!%p141_p4)
}
   0xc   :  { %20 = dma.hbm_to_vmem [thread:$0]  %s232_s0, 256, %s18_s10, [#allocation3]  }
   0xd   :  { %185 = dma.done.wait [#allocation3], 256  }
   0xe   :  { %186 = vsyncadd [#allocation3], 4294967040  ;;  %v24_v0 = vld [vmem:[#allocation2] sm:$0xff]  ;;  %s192_s14 = smov 112   ;;  %s193_s15 = smov 127   ;;  %v25_v1 = vld [vmem:[#allocation2 + $0x8] sm:$0xff]  ;;  %v30_v2 = vlaneseq }
   0xf   :  { %35 = vrot.lane.b32.xlu1 %v24_v0, %s192_s14  ;;  %26 = vrot.lane.b32.xlu0 %v24_v0, %s193_s15  ;;  %s194_s0 = smov [#allocation5]   ;;  %s195_s17 = smov [#allocation6]  }
  0x10   :  { %v31_v3 = vand.u32 127, %v30_v2  ;;  %s97_s16 = sshll.u32 %s194_s0, 4  ;;  %s107_s18 = sshll.u32 %s195_s17, 4  ;;  %s98_s16 = int_to_ptr.vmem [resolvable:$true] %s97_s16  ;;  %s108_s18 = int_to_ptr.vmem [resolvable:$true] %s107_s18 }
  0x11   :  { %s145_s19 = scalar_lea.vmem %s98_s16, 256  ;;  %p150_p6 = scmp.lt.s32.totalorder %s98_s16, %s98_s16 }
  0x12   :  { %v42_v4 = vadd.s32 128, %v31_v3  ;;  %v47_v7 = vand.u32 15, %v31_v3  ;;  %vm39_vm0 = vcmp.lt.s32.totalorder %v31_v3, 112  ;;  %vm32_vm1 = vcmp.lt.s32.totalorder %v31_v3, 127  ;;  %p146_p5 = scmp.ne.s32.totalorder %s98_s16, %s145_s19  ;;  %p151_p7 = scmp.lt.s32.totalorder %s145_s19, %s145_s19 }
  0x13   :  { %37 = vrot.lane.b32.xlu1 %v25_v1, %s192_s14  ;;  %28 = vrot.lane.b32.xlu0 %v25_v1, %s193_s15 }
  0x14   :  { %v54_v8 = vand.u32 15, %v42_v4  ;;  %vm214_vm2 = vcmp.lt.s32.totalorder %v47_v7, 15  ;;  %vm78_vm4 = vcmp.lt.s32.totalorder %v42_v4, 240  ;;  %p152_p8 = por %p151_p7, %p150_p6 }
  0x16   :  { %vm218_vm3 = vcmp.lt.s32.totalorder %v54_v8, 15  ;;  %p153_p9 = pnand %p152_p8, %p146_p5 }
  0x81   :  { %v36_v5 = vpop.permute.xlu1 %35  ;;  %v27_v6 = vpop.permute.xlu0 %26 }
  0x85   :  { %v38_v9 = vpop.permute.xlu1 %37  ;;  %v29_v10 = vpop.permute.xlu0 %28 }
  0x86   :  { %v40_v13 = vsel %vm39_vm0, %v36_v5, %v38_v9  ;;  %v41_v14 = vsel %vm39_vm0, %v38_v9, %v36_v5  ;;  %v33_v15 = vsel %vm32_vm1, %v27_v6, %v29_v10  ;;  %v34_v16 = vsel %vm32_vm1, %v29_v10, %v27_v6 }
  0x87   :  { %v79_v17 = vsub.f32 %v40_v13, %v24_v0  ;;  %v80_v18 = vsub.f32 %v41_v14, %v25_v1  ;;  %v69_v19 = vsub.f32 %v33_v15, %v24_v0  ;;  %v70_v20 = vsub.f32 %v34_v16, %v25_v1 }
  0x89   :  { %89 = vst [vmem:[#allocation6] sm:$0xff] %v79_v17  ;;  %v75_v21 = vsel %vm214_vm2, %v69_v19, 0.0  ;;  %v76_v22 = vsel %vm218_vm3, %v70_v20, 0.0  ;;  %v86_v23 = vsel %vm78_vm4, %v80_v18, 0.0 }
  0x8a   :  { %87 = vst [vmem:[#allocation5] sm:$0xff] %v75_v21  ;;  %88 = vst [vmem:[#allocation5 + $0x8] sm:$0xff] %v76_v22 }
  0x8b   :  { %90 = vst [vmem:[#allocation6 + $0x8] sm:$0xff] %v86_v23 }
  0x8c   :  { %156 = shalt.err (!%p153_p9)
}
  0x8d   :  { %100 = dma.vmem_to_hbm [thread:$0]  %s98_s16, 256, %s233_s1, [#allocation4]  }
  0x8e   :  { %s165_s22 = scalar_lea.vmem %s108_s18, 256  ;;  %p170_p11 = scmp.lt.s32.totalorder %s108_s18, %s108_s18 }
  0x8f   :  { %p166_p10 = scmp.ne.s32.totalorder %s108_s18, %s165_s22  ;;  %p171_p12 = scmp.lt.s32.totalorder %s165_s22, %s165_s22 }
  0x91   :  { %p172_p13 = por %p171_p12, %p170_p11 }
  0x93   :  { %p173_p0 = pnand %p172_p13, %p166_p10 }
  0x95   :  { %176 = shalt.err (!%p173_p0)
}
  0x96   :  { %110 = dma.vmem_to_hbm [thread:$0]  %s108_s18, 256, %s234_s2, [#allocation7]  }
  0x97   :  { %187 = dma.done.wait [#allocation4], 256  }
  0x98   :  { %188 = vsyncadd [#allocation4], 4294967040 }
  0x99   :  { %189 = dma.done.wait [#allocation7], 256  }
  0x9a   :  { %190 = vsyncadd [#allocation7], 4294967040 }
  0x9b   :  { %117 = vsyncpa [#allocation3], 1 }
  0x9c   :  { %118 = vsyncpa [#allocation4], 1 }
  0x9d   :  { %119 = vsyncpa [#allocation7], 1 }

</bundles_post_ra>
